<compile_context>
chip_gen: v6e
topology: v6e:2x2x1
jax: 0.10.0
libtpu: 0.0.40
codegen_flags: <defaults>
</compile_context>

<pallas_src>
import functools

import jax
import jax.numpy as jnp
from jax import lax
from jax.experimental import pallas as pl
from jax.experimental.pallas import tpu as pltpu


def _convbn_kernel(x_ref, w_ref, b_ref, g_ref, bt_ref, mask_ref, o_ref,
                   y_scr, ssum, ssq, sc_scr, sh_scr,
                   *, KH, KW, S, Ws, eps, inv_count):
    """Fused Conv2d + training-mode BatchNorm2d.

    Grid = (phase, image), both 'arbitrary' (state carried in VMEM scratch).
      phase 0: y[n] = W*x[n] + b  (K*K accumulated matmuls over lane-flat taps),
               kept in VMEM scratch; per-channel sum / sum-of-squares
               accumulated over the batch (junk columns masked out).
      phase 1: at the first step fold stats into (scale, shift); every step
               applies the affine to y[n] and stores the output.

    x_ref   : (S*S*Cin, Hs*Ws + tail)  bf16   space-to-depth flat padded image
    w_ref   : (KH*KW, Cout, Cin)       bf16   per-tap weight matrices
    b_ref / g_ref / bt_ref : (Cout, 1) f32    conv bias / BN gamma / BN beta
    mask_ref: (1, OH*Ws)               f32    1.0 on valid output columns
    o_ref   : (Cout, OH*Ws)            f32
    """
    phase = pl.program_id(0)
    n = pl.program_id(1)
    Cout = w_ref.shape[1]
    Cin = w_ref.shape[2]
    L = o_ref.shape[-1]                    # OH * Ws (includes junk cols ow>=OW)

    @pl.when(phase == 0)
    def _conv_and_stats():
        @pl.when(n == 0)
        def _init():
            ssum[...] = jnp.zeros_like(ssum)
            ssq[...] = jnp.zeros_like(ssq)

        xv = x_ref[...]                                  # (S*S*Cin, LX) bf16
        acc = jnp.zeros((Cout, L), jnp.float32)
        for kh in range(KH):                             # unrolled K*K matmuls
            for kw in range(KW):
                r, dh = kh % S, kh // S
                c, dw = kw % S, kw // S
                row0 = (r * S + c) * Cin
                col0 = dh * Ws + dw
                tap = xv[row0:row0 + Cin, col0:col0 + L]  # (Cin, L) static slice
                acc = acc + jnp.dot(w_ref[kh * KW + kw], tap,
                                    preferred_element_type=jnp.float32)
        y = acc + b_ref[...]                             # bias over lanes
        y_scr[n] = y                                     # conv output stays in VMEM
        yv = y * mask_ref[...]                           # drop junk columns from stats
        ssum[...] += jnp.sum(yv, axis=1, keepdims=True)
        ssq[...] += jnp.sum(yv * yv, axis=1, keepdims=True)

    @pl.when(phase == 1)
    def _bn_apply():
        @pl.when(n == 0)
        def _fold():                                     # batch stats -> one affine
            mean = ssum[...] * inv_count
            var = ssq[...] * inv_count - mean * mean     # biased var (torch training)
            inv_std = lax.rsqrt(var + eps)
            sc = g_ref[...] * inv_std
            sc_scr[...] = sc
            sh_scr[...] = bt_ref[...] - mean * sc
        o_ref[...] = y_scr[n] * sc_scr[...] + sh_scr[...]


@functools.partial(jax.jit, static_argnames=("stride", "padding", "eps"))
def conv_bn(x, w, b, gamma, beta, *, stride, padding, eps=1e-5):
    """ConvBlock forward.  x: (N,Cin,H,W); w: (Cout,Cin,K,K); b/gamma/beta: (Cout,).
    Returns (N, Cout, OH, OW) float32."""
    N, Cin, H, W = x.shape
    Cout, Cin2, KH, KW = w.shape
    assert Cin == Cin2
    S, P = stride, padding
    OH = (H + 2 * P - KH) // S + 1
    OW = (W + 2 * P - KW) // S + 1

    # ---- layout prep only (cheap XLA ops, no K*K im2col blow-up) ----
    Hp, Wp = H + 2 * P, W + 2 * P
    # space-to-depth grid, padded so every tap's flat lane slice stays in bounds
    Hs = max(-(-Hp // S), (KH - 1) // S + OH)
    Ws = max(-(-Wp // S), (KW - 1) // S + OW)
    xp = jnp.pad(x, ((0, 0), (0, 0), (P, Hs * S - H - P), (P, Ws * S - W - P)))
    xsd = xp.reshape(N, Cin, Hs, S, Ws, S).transpose(0, 3, 5, 1, 2, 4)
    RC = S * S * Cin
    tail = (KW - 1) // S
    LX = Hs * Ws + tail
    xflat = jnp.pad(xsd.reshape(N, RC, Hs * Ws),
                    ((0, 0), (0, 0), (0, tail))).astype(jnp.bfloat16)

    L = OH * Ws                              # flat output width incl. junk cols
    wtap = w.transpose(2, 3, 0, 1).reshape(KH * KW, Cout, Cin).astype(jnp.bfloat16)
    b2 = b.reshape(Cout, 1).astype(jnp.float32)
    g2 = gamma.reshape(Cout, 1).astype(jnp.float32)
    bt2 = beta.reshape(Cout, 1).astype(jnp.float32)
    mask = (jnp.arange(L) % Ws < OW).astype(jnp.float32).reshape(1, L)

    inv_count = 1.0 / float(N * OH * OW)

    # y for the whole batch is held in VMEM scratch across the two phases.
    assert N * Cout * L * 4 <= 24 * 1024 * 1024, (
        "TODO(synk): spill y to HBM (two-pass variant) for large batches/layers")

    kernel = functools.partial(
        _convbn_kernel, KH=KH, KW=KW, S=S, Ws=Ws,
        eps=float(eps), inv_count=inv_count)

    out = pl.pallas_call(
        kernel,
        out_shape=jax.ShapeDtypeStruct((N, Cout, L), jnp.float32),
        grid_spec=pltpu.PrefetchScalarGridSpec(
            num_scalar_prefetch=0,
            grid=(2, N),                                   # (phase, image)
            in_specs=[
                # image block: only fetched during phase 0 (pinned to 0 in phase 1)
                pl.BlockSpec((None, RC, LX), lambda p, n: ((1 - p) * n, 0, 0)),
                pl.BlockSpec((KH * KW, Cout, Cin), lambda p, n: (0, 0, 0)),
                pl.BlockSpec((Cout, 1), lambda p, n: (0, 0)),
                pl.BlockSpec((Cout, 1), lambda p, n: (0, 0)),
                pl.BlockSpec((Cout, 1), lambda p, n: (0, 0)),
                pl.BlockSpec((1, L), lambda p, n: (0, 0)),
            ],
            # phase 0 parks the output on block 0 (never flushed before phase 1
            # overwrites it); phase 1 writes block n per image.
            out_specs=pl.BlockSpec((None, Cout, L), lambda p, n: (p * n, 0, 0)),
            scratch_shapes=[
                pltpu.VMEM((N, Cout, L), jnp.float32),     # conv+bias outputs
                pltpu.VMEM((Cout, 1), jnp.float32),        # per-channel sum
                pltpu.VMEM((Cout, 1), jnp.float32),        # per-channel sum of squares
                pltpu.VMEM((Cout, 1), jnp.float32),        # folded BN scale
                pltpu.VMEM((Cout, 1), jnp.float32),        # folded BN shift
            ],
        ),
        # Both axes carry VMEM state (batch stats / resident y), so sequential.
        compiler_params=pltpu.CompilerParams(
            dimension_semantics=("arbitrary", "arbitrary")),
        cost_estimate=pl.CostEstimate(
            flops=2 * N * Cout * Cin * KH * KW * L + 2 * N * Cout * L,
            transcendentals=Cout,
            bytes_accessed=(2 * N * RC * LX + 2 * KH * KW * Cout * Cin
                            + 4 * (3 * Cout + L) + 4 * N * Cout * L),
        ),
    )(xflat, wtap, b2, g2, bt2, mask)

    # drop the junk columns (ow >= OW) introduced by the flat-lane tap trick
    return out.reshape(N, Cout, OH, Ws)[:, :, :, :OW]


def _reference(x, w, b, gamma, beta, stride, padding, eps):
    """Pure-JAX reference: Conv2d followed by training-mode BatchNorm2d."""
    y = lax.conv_general_dilated(
        x, w, window_strides=(stride, stride),
        padding=[(padding, padding), (padding, padding)],
        dimension_numbers=("NCHW", "OIHW", "NCHW"),
    ) + b[None, :, None, None]
    mu = jnp.mean(y, axis=(0, 2, 3))
    var = jnp.var(y, axis=(0, 2, 3))                      # biased variance (torch)
    inv = 1.0 / jnp.sqrt(var + eps)
    return ((y - mu[None, :, None, None]) * (gamma * inv)[None, :, None, None]
            + beta[None, :, None, None])


if __name__ == "__main__":
    # ConvBlock(4, 8, kernel_size=3, stride=1, padding=1) on a (2,4,16,16) input.
    N, Cin, Cout, H, W = 2, 4, 8, 16, 16
    K, S, P = 3, 1, 1
    eps = 1e-5

    key = jax.random.PRNGKey(0)
    kx, kw_, kb, kg, kbt = jax.random.split(key, 5)

    x = jax.random.normal(kx, (N, Cin, H, W), dtype=jnp.float32)

    # Conv2d default init: uniform(-1/sqrt(fan_in), 1/sqrt(fan_in)).
    fan_in = Cin * K * K
    bound = 1.0 / (fan_in ** 0.5)
    w = jax.random.uniform(kw_, (Cout, Cin, K, K), jnp.float32, -bound, bound)
    b = jax.random.uniform(kb, (Cout,), jnp.float32, -bound, bound)

    # BatchNorm2d affine params (perturbed from torch defaults to exercise them).
    gamma = 1.0 + 0.1 * jax.random.normal(kg, (Cout,), jnp.float32)
    beta = 0.1 * jax.random.normal(kbt, (Cout,), jnp.float32)

    out = conv_bn(x, w, b, gamma, beta, stride=S, padding=P, eps=eps)
    out = jax.block_until_ready(out)

    # Reference uses the same bf16-rounded conv inputs (the kernel carries
    # activations/weights in bf16 with f32 MXU accumulation).
    x_r = x.astype(jnp.bfloat16).astype(jnp.float32)
    w_r = w.astype(jnp.bfloat16).astype(jnp.float32)
    ref = _reference(x_r, w_r, b, gamma, beta, S, P, eps)

    assert out.shape == (N, Cout, H, W), out.shape
    assert jnp.allclose(out, ref, atol=2e-3, rtol=2e-3), (
        "mismatch vs reference, max abs err = "
        + str(float(jnp.max(jnp.abs(out - ref)))))

    print("KERNEL_OK")
</pallas_src>

<mosaic_0001>
module attributes {stable_mosaic.version = 11 : i64} {
  func.func @_convbn_kernel(%arg0: i32, %arg1: i32, %arg2: memref<1x4x326xbf16, #tpu.memory_space<vmem>>, %arg3: memref<9x8x4xbf16, #tpu.memory_space<vmem>>, %arg4: memref<8x1xf32, #tpu.memory_space<vmem>>, %arg5: memref<8x1xf32, #tpu.memory_space<vmem>>, %arg6: memref<8x1xf32, #tpu.memory_space<vmem>>, %arg7: memref<1x288xf32, #tpu.memory_space<vmem>>, %arg8: memref<1x8x288xf32, #tpu.memory_space<vmem>>, %arg9: memref<2x8x288xf32, #tpu.memory_space<vmem>>, %arg10: memref<8x1xf32, #tpu.memory_space<vmem>>, %arg11: memref<8x1xf32, #tpu.memory_space<vmem>>, %arg12: memref<8x1xf32, #tpu.memory_space<vmem>>, %arg13: memref<8x1xf32, #tpu.memory_space<vmem>>) attributes {dimension_semantics = [#tpu.dimension_semantics<arbitrary>, #tpu.dimension_semantics<arbitrary>], iteration_bounds = array<i64: 2, 2>, scalar_prefetch = 0 : i64, scratch_operands = 5 : i64, tpu.core_type = #tpu.core_type<tc>, window_params = [{transform_indices = @transform_0, window_bounds = array<i64: 1, 4, 326>}, {pipeline_mode = #tpu.pipeline_mode<synchronous>, transform_indices = @transform_1, window_bounds = array<i64: 9, 8, 4>}, {pipeline_mode = #tpu.pipeline_mode<synchronous>, transform_indices = @transform_2, window_bounds = array<i64: 8, 1>}, {pipeline_mode = #tpu.pipeline_mode<synchronous>, transform_indices = @transform_3, window_bounds = array<i64: 8, 1>}, {pipeline_mode = #tpu.pipeline_mode<synchronous>, transform_indices = @transform_4, window_bounds = array<i64: 8, 1>}, {pipeline_mode = #tpu.pipeline_mode<synchronous>, transform_indices = @transform_5, window_bounds = array<i64: 1, 288>}, {transform_indices = @transform_6, window_bounds = array<i64: 1, 8, 288>}]} {
    %c0_i32 = arith.constant 0 : i32
    %0 = arith.cmpi eq, %arg0, %c0_i32 : i32
    %1 = arith.extui %0 : i1 to i32
    %c0_i32_0 = arith.constant 0 : i32
    %2 = arith.cmpi ne, %1, %c0_i32_0 : i32
    scf.if %2 {
      %c0_i32_2 = arith.constant 0 : i32
      %6 = arith.cmpi eq, %arg1, %c0_i32_2 : i32
      %7 = arith.extui %6 : i1 to i32
      %c0_i32_3 = arith.constant 0 : i32
      %8 = arith.cmpi ne, %7, %c0_i32_3 : i32
      scf.if %8 {
        %cst_50 = arith.constant 0.000000e+00 : f32
        %78 = vector.broadcast %cst_50 : f32 to vector<8x1xf32>
        %c0_51 = arith.constant 0 : index
        %c0_52 = arith.constant 0 : index
        %79 = vector.load %arg10[%c0_51, %c0_52] : memref<8x1xf32, #tpu.memory_space<vmem>>, vector<8x1xf32>
        tpu.vector_store %arg10[%c0_51, %c0_52], %78 {strides = array<i32>} : memref<8x1xf32, #tpu.memory_space<vmem>>, vector<8x1xf32>,
        %cst_53 = arith.constant 0.000000e+00 : f32
        %80 = vector.broadcast %cst_53 : f32 to vector<8x1xf32>
        %c0_54 = arith.constant 0 : index
        %c0_55 = arith.constant 0 : index
        %81 = vector.load %arg11[%c0_54, %c0_55] : memref<8x1xf32, #tpu.memory_space<vmem>>, vector<8x1xf32>
        tpu.vector_store %arg11[%c0_54, %c0_55], %80 {strides = array<i32>} : memref<8x1xf32, #tpu.memory_space<vmem>>, vector<8x1xf32>,
      } else {
      }
      %c0 = arith.constant 0 : index
      %c0_4 = arith.constant 0 : index
      %c0_5 = arith.constant 0 : index
      %9 = vector.load %arg2[%c0, %c0_4, %c0_5] : memref<1x4x326xbf16, #tpu.memory_space<vmem>>, vector<1x4x326xbf16>
      %10 = vector.shape_cast %9 : vector<1x4x326xbf16> to vector<4x326xbf16>
      %cst = arith.constant 0.000000e+00 : f32
      %11 = vector.broadcast %cst : f32 to vector<8x288xf32>
      %12 = vector.extract_strided_slice %10 {offsets = [0, 0], sizes = [4, 288], strides = [1, 1]} : vector<4x326xbf16> to vector<4x288xbf16>
      %c0_6 = arith.constant 0 : index
      %c0_7 = arith.constant 0 : index
      %c0_8 = arith.constant 0 : index
      %13 = vector.load %arg3[%c0_6, %c0_7, %c0_8] : memref<9x8x4xbf16, #tpu.memory_space<vmem>>, vector<1x8x4xbf16>
      %14 = vector.shape_cast %13 : vector<1x8x4xbf16> to vector<8x4xbf16>
      %cst_9 = arith.constant dense<0.000000e+00> : vector<8x288xf32>
      %15 = tpu.matmul %14, %12, %cst_9 {dimension_numbers = #tpu.dot_dimension_numbers<[1], [0], [0], [1], [0, 0, 1, 1], [], []>} : vector<8x4xbf16>, vector<4x288xbf16>, vector<8x288xf32> -> vector<8x288xf32>
      %16 = arith.addf %11, %15 : vector<8x288xf32>
      %17 = vector.extract_strided_slice %10 {offsets = [0, 1], sizes = [4, 288], strides = [1, 1]} : vector<4x326xbf16> to vector<4x288xbf16>
      %c1 = arith.constant 1 : index
      %c0_10 = arith.constant 0 : index
      %c0_11 = arith.constant 0 : index
      %18 = vector.load %arg3[%c1, %c0_10, %c0_11] : memref<9x8x4xbf16, #tpu.memory_space<vmem>>, vector<1x8x4xbf16>
      %19 = vector.shape_cast %18 : vector<1x8x4xbf16> to vector<8x4xbf16>
      %cst_12 = arith.constant dense<0.000000e+00> : vector<8x288xf32>
      %20 = tpu.matmul %19, %17, %cst_12 {dimension_numbers = #tpu.dot_dimension_numbers<[1], [0], [0], [1], [0, 0, 1, 1], [], []>} : vector<8x4xbf16>, vector<4x288xbf16>, vector<8x288xf32> -> vector<8x288xf32>
      %21 = arith.addf %16, %20 : vector<8x288xf32>
      %22 = vector.extract_strided_slice %10 {offsets = [0, 2], sizes = [4, 288], strides = [1, 1]} : vector<4x326xbf16> to vector<4x288xbf16>
      %c2 = arith.constant 2 : index
      %c0_13 = arith.constant 0 : index
      %c0_14 = arith.constant 0 : index
      %23 = vector.load %arg3[%c2, %c0_13, %c0_14] : memref<9x8x4xbf16, #tpu.memory_space<vmem>>, vector<1x8x4xbf16>
      %24 = vector.shape_cast %23 : vector<1x8x4xbf16> to vector<8x4xbf16>
      %cst_15 = arith.constant dense<0.000000e+00> : vector<8x288xf32>
      %25 = tpu.matmul %24, %22, %cst_15 {dimension_numbers = #tpu.dot_dimension_numbers<[1], [0], [0], [1], [0, 0, 1, 1], [], []>} : vector<8x4xbf16>, vector<4x288xbf16>, vector<8x288xf32> -> vector<8x288xf32>
      %26 = arith.addf %21, %25 : vector<8x288xf32>
      %27 = vector.extract_strided_slice %10 {offsets = [0, 18], sizes = [4, 288], strides = [1, 1]} : vector<4x326xbf16> to vector<4x288xbf16>
      %c3 = arith.constant 3 : index
      %c0_16 = arith.constant 0 : index
      %c0_17 = arith.constant 0 : index
      %28 = vector.load %arg3[%c3, %c0_16, %c0_17] : memref<9x8x4xbf16, #tpu.memory_space<vmem>>, vector<1x8x4xbf16>
      %29 = vector.shape_cast %28 : vector<1x8x4xbf16> to vector<8x4xbf16>
      %cst_18 = arith.constant dense<0.000000e+00> : vector<8x288xf32>
      %30 = tpu.matmul %29, %27, %cst_18 {dimension_numbers = #tpu.dot_dimension_numbers<[1], [0], [0], [1], [0, 0, 1, 1], [], []>} : vector<8x4xbf16>, vector<4x288xbf16>, vector<8x288xf32> -> vector<8x288xf32>
      %31 = arith.addf %26, %30 : vector<8x288xf32>
      %32 = vector.extract_strided_slice %10 {offsets = [0, 19], sizes = [4, 288], strides = [1, 1]} : vector<4x326xbf16> to vector<4x288xbf16>
      %c4 = arith.constant 4 : index
      %c0_19 = arith.constant 0 : index
      %c0_20 = arith.constant 0 : index
      %33 = vector.load %arg3[%c4, %c0_19, %c0_20] : memref<9x8x4xbf16, #tpu.memory_space<vmem>>, vector<1x8x4xbf16>
      %34 = vector.shape_cast %33 : vector<1x8x4xbf16> to vector<8x4xbf16>
      %cst_21 = arith.constant dense<0.000000e+00> : vector<8x288xf32>
      %35 = tpu.matmul %34, %32, %cst_21 {dimension_numbers = #tpu.dot_dimension_numbers<[1], [0], [0], [1], [0, 0, 1, 1], [], []>} : vector<8x4xbf16>, vector<4x288xbf16>, vector<8x288xf32> -> vector<8x288xf32>
      %36 = arith.addf %31, %35 : vector<8x288xf32>
      %37 = vector.extract_strided_slice %10 {offsets = [0, 20], sizes = [4, 288], strides = [1, 1]} : vector<4x326xbf16> to vector<4x288xbf16>
      %c5 = arith.constant 5 : index
      %c0_22 = arith.constant 0 : index
      %c0_23 = arith.constant 0 : index
      %38 = vector.load %arg3[%c5, %c0_22, %c0_23] : memref<9x8x4xbf16, #tpu.memory_space<vmem>>, vector<1x8x4xbf16>
      %39 = vector.shape_cast %38 : vector<1x8x4xbf16> to vector<8x4xbf16>
      %cst_24 = arith.constant dense<0.000000e+00> : vector<8x288xf32>
      %40 = tpu.matmul %39, %37, %cst_24 {dimension_numbers = #tpu.dot_dimension_numbers<[1], [0], [0], [1], [0, 0, 1, 1], [], []>} : vector<8x4xbf16>, vector<4x288xbf16>, vector<8x288xf32> -> vector<8x288xf32>
      %41 = arith.addf %36, %40 : vector<8x288xf32>
      %42 = vector.extract_strided_slice %10 {offsets = [0, 36], sizes = [4, 288], strides = [1, 1]} : vector<4x326xbf16> to vector<4x288xbf16>
      %c6 = arith.constant 6 : index
      %c0_25 = arith.constant 0 : index
      %c0_26 = arith.constant 0 : index
      %43 = vector.load %arg3[%c6, %c0_25, %c0_26] : memref<9x8x4xbf16, #tpu.memory_space<vmem>>, vector<1x8x4xbf16>
      %44 = vector.shape_cast %43 : vector<1x8x4xbf16> to vector<8x4xbf16>
      %cst_27 = arith.constant dense<0.000000e+00> : vector<8x288xf32>
      %45 = tpu.matmul %44, %42, %cst_27 {dimension_numbers = #tpu.dot_dimension_numbers<[1], [0], [0], [1], [0, 0, 1, 1], [], []>} : vector<8x4xbf16>, vector<4x288xbf16>, vector<8x288xf32> -> vector<8x288xf32>
      %46 = arith.addf %41, %45 : vector<8x288xf32>
      %47 = vector.extract_strided_slice %10 {offsets = [0, 37], sizes = [4, 288], strides = [1, 1]} : vector<4x326xbf16> to vector<4x288xbf16>
      %c7 = arith.constant 7 : index
      %c0_28 = arith.constant 0 : index
      %c0_29 = arith.constant 0 : index
      %48 = vector.load %arg3[%c7, %c0_28, %c0_29] : memref<9x8x4xbf16, #tpu.memory_space<vmem>>, vector<1x8x4xbf16>
      %49 = vector.shape_cast %48 : vector<1x8x4xbf16> to vector<8x4xbf16>
      %cst_30 = arith.constant dense<0.000000e+00> : vector<8x288xf32>
      %50 = tpu.matmul %49, %47, %cst_30 {dimension_numbers = #tpu.dot_dimension_numbers<[1], [0], [0], [1], [0, 0, 1, 1], [], []>} : vector<8x4xbf16>, vector<4x288xbf16>, vector<8x288xf32> -> vector<8x288xf32>
      %51 = arith.addf %46, %50 : vector<8x288xf32>
      %52 = vector.extract_strided_slice %10 {offsets = [0, 38], sizes = [4, 288], strides = [1, 1]} : vector<4x326xbf16> to vector<4x288xbf16>
      %c8 = arith.constant 8 : index
      %c0_31 = arith.constant 0 : index
      %c0_32 = arith.constant 0 : index
      %53 = vector.load %arg3[%c8, %c0_31, %c0_32] : memref<9x8x4xbf16, #tpu.memory_space<vmem>>, vector<1x8x4xbf16>
      %54 = vector.shape_cast %53 : vector<1x8x4xbf16> to vector<8x4xbf16>
      %cst_33 = arith.constant dense<0.000000e+00> : vector<8x288xf32>
      %55 = tpu.matmul %54, %52, %cst_33 {dimension_numbers = #tpu.dot_dimension_numbers<[1], [0], [0], [1], [0, 0, 1, 1], [], []>} : vector<8x4xbf16>, vector<4x288xbf16>, vector<8x288xf32> -> vector<8x288xf32>
      %56 = arith.addf %51, %55 : vector<8x288xf32>
      %c0_34 = arith.constant 0 : index
      %c0_35 = arith.constant 0 : index
      %57 = vector.load %arg4[%c0_34, %c0_35] : memref<8x1xf32, #tpu.memory_space<vmem>>, vector<8x1xf32>
      %58 = vector.broadcast %57 : vector<8x1xf32> to vector<8x288xf32>
      %59 = arith.addf %56, %58 : vector<8x288xf32>
      %60 = arith.index_cast %arg1 : i32 to index
      %c0_36 = arith.constant 0 : index
      %c0_37 = arith.constant 0 : index
      %61 = vector.load %arg9[%60, %c0_36, %c0_37] : memref<2x8x288xf32, #tpu.memory_space<vmem>>, vector<1x8x288xf32>
      %62 = vector.shape_cast %61 : vector<1x8x288xf32> to vector<8x288xf32>
      %63 = vector.shape_cast %59 : vector<8x288xf32> to vector<1x8x288xf32>
      tpu.vector_store %arg9[%60, %c0_36, %c0_37], %63 {strides = array<i32>} : memref<2x8x288xf32, #tpu.memory_space<vmem>>, vector<1x8x288xf32>,
      %c0_38 = arith.constant 0 : index
      %c0_39 = arith.constant 0 : index
      %64 = vector.load %arg7[%c0_38, %c0_39] : memref<1x288xf32, #tpu.memory_space<vmem>>, vector<1x288xf32>
      %65 = vector.broadcast %64 : vector<1x288xf32> to vector<8x288xf32>
      %66 = arith.mulf %59, %65 : vector<8x288xf32>
      %c0_40 = arith.constant 0 : index
      %c0_41 = arith.constant 0 : index
      %67 = vector.load %arg10[%c0_40, %c0_41] : memref<8x1xf32, #tpu.memory_space<vmem>>, vector<8x1xf32>
      %cst_42 = arith.constant dense<0.000000e+00> : vector<8xf32>
      %68 = vector.multi_reduction <add>, %66, %cst_42 [1] : vector<8x288xf32> to vector<8xf32>
      %69 = vector.shape_cast %68 : vector<8xf32> to vector<8x1xf32>
      %70 = arith.addf %67, %69 : vector<8x1xf32>
      %c0_43 = arith.constant 0 : index
      %c0_44 = arith.constant 0 : index
      %71 = vector.load %arg10[%c0_43, %c0_44] : memref<8x1xf32, #tpu.memory_space<vmem>>, vector<8x1xf32>
      tpu.vector_store %arg10[%c0_43, %c0_44], %70 {strides = array<i32>} : memref<8x1xf32, #tpu.memory_space<vmem>>, vector<8x1xf32>,
      %c0_45 = arith.constant 0 : index
      %c0_46 = arith.constant 0 : index
      %72 = vector.load %arg11[%c0_45, %c0_46] : memref<8x1xf32, #tpu.memory_space<vmem>>, vector<8x1xf32>
      %73 = arith.mulf %66, %66 : vector<8x288xf32>
      %cst_47 = arith.constant dense<0.000000e+00> : vector<8xf32>
      %74 = vector.multi_reduction <add>, %73, %cst_47 [1] : vector<8x288xf32> to vector<8xf32>
      %75 = vector.shape_cast %74 : vector<8xf32> to vector<8x1xf32>
      %76 = arith.addf %72, %75 : vector<8x1xf32>
      %c0_48 = arith.constant 0 : index
      %c0_49 = arith.constant 0 : index
      %77 = vector.load %arg11[%c0_48, %c0_49] : memref<8x1xf32, #tpu.memory_space<vmem>>, vector<8x1xf32>
      tpu.vector_store %arg11[%c0_48, %c0_49], %76 {strides = array<i32>} : memref<8x1xf32, #tpu.memory_space<vmem>>, vector<8x1xf32>,
    } else {
    }
    %c1_i32 = arith.constant 1 : i32
    %3 = arith.cmpi eq, %arg0, %c1_i32 : i32
    %4 = arith.extui %3 : i1 to i32
    %c0_i32_1 = arith.constant 0 : i32
    %5 = arith.cmpi ne, %4, %c0_i32_1 : i32
    scf.if %5 {
      %c0_i32_2 = arith.constant 0 : i32
      %6 = arith.cmpi eq, %arg1, %c0_i32_2 : i32
      %7 = arith.extui %6 : i1 to i32
      %c0_i32_3 = arith.constant 0 : i32
      %8 = arith.cmpi ne, %7, %c0_i32_3 : i32
      scf.if %8 {
        %c0_12 = arith.constant 0 : index
        %c0_13 = arith.constant 0 : index
        %21 = vector.load %arg10[%c0_12, %c0_13] : memref<8x1xf32, #tpu.memory_space<vmem>>, vector<8x1xf32>
        %cst = arith.constant 0.001953125 : f32
        %22 = vector.broadcast %cst : f32 to vector<8x1xf32>
        %23 = arith.mulf %21, %22 : vector<8x1xf32>
        %c0_14 = arith.constant 0 : index
        %c0_15 = arith.constant 0 : index
        %24 = vector.load %arg11[%c0_14, %c0_15] : memref<8x1xf32, #tpu.memory_space<vmem>>, vector<8x1xf32>
        %cst_16 = arith.constant 0.001953125 : f32
        %25 = vector.broadcast %cst_16 : f32 to vector<8x1xf32>
        %26 = arith.mulf %24, %25 : vector<8x1xf32>
        %27 = arith.mulf %23, %23 : vector<8x1xf32>
        %28 = arith.subf %26, %27 : vector<8x1xf32>
        %cst_17 = arith.constant 9.99999974E-6 : f32
        %29 = vector.broadcast %cst_17 : f32 to vector<8x1xf32>
        %30 = arith.addf %28, %29 : vector<8x1xf32>
        %31 = math.rsqrt %30 : vector<8x1xf32>
        %c0_18 = arith.constant 0 : index
        %c0_19 = arith.constant 0 : index
        %32 = vector.load %arg5[%c0_18, %c0_19] : memref<8x1xf32, #tpu.memory_space<vmem>>, vector<8x1xf32>
        %33 = arith.mulf %32, %31 : vector<8x1xf32>
        %c0_20 = arith.constant 0 : index
        %c0_21 = arith.constant 0 : index
        %34 = vector.load %arg12[%c0_20, %c0_21] : memref<8x1xf32, #tpu.memory_space<vmem>>, vector<8x1xf32>
        tpu.vector_store %arg12[%c0_20, %c0_21], %33 {strides = array<i32>} : memref<8x1xf32, #tpu.memory_space<vmem>>, vector<8x1xf32>,
        %c0_22 = arith.constant 0 : index
        %c0_23 = arith.constant 0 : index
        %35 = vector.load %arg6[%c0_22, %c0_23] : memref<8x1xf32, #tpu.memory_space<vmem>>, vector<8x1xf32>
        %36 = arith.mulf %23, %33 : vector<8x1xf32>
        %37 = arith.subf %35, %36 : vector<8x1xf32>
        %c0_24 = arith.constant 0 : index
        %c0_25 = arith.constant 0 : index
        %38 = vector.load %arg13[%c0_24, %c0_25] : memref<8x1xf32, #tpu.memory_space<vmem>>, vector<8x1xf32>
        tpu.vector_store %arg13[%c0_24, %c0_25], %37 {strides = array<i32>} : memref<8x1xf32, #tpu.memory_space<vmem>>, vector<8x1xf32>,
      } else {
      }
      %9 = arith.index_cast %arg1 : i32 to index
      %c0 = arith.constant 0 : index
      %c0_4 = arith.constant 0 : index
      %10 = vector.load %arg9[%9, %c0, %c0_4] : memref<2x8x288xf32, #tpu.memory_space<vmem>>, vector<1x8x288xf32>
      %11 = vector.shape_cast %10 : vector<1x8x288xf32> to vector<8x288xf32>
      %c0_5 = arith.constant 0 : index
      %c0_6 = arith.constant 0 : index
      %12 = vector.load %arg12[%c0_5, %c0_6] : memref<8x1xf32, #tpu.memory_space<vmem>>, vector<8x1xf32>
      %13 = vector.broadcast %12 : vector<8x1xf32> to vector<8x288xf32>
      %14 = arith.mulf %11, %13 : vector<8x288xf32>
      %c0_7 = arith.constant 0 : index
      %c0_8 = arith.constant 0 : index
      %15 = vector.load %arg13[%c0_7, %c0_8] : memref<8x1xf32, #tpu.memory_space<vmem>>, vector<8x1xf32>
      %16 = vector.broadcast %15 : vector<8x1xf32> to vector<8x288xf32>
      %17 = arith.addf %14, %16 : vector<8x288xf32>
      %c0_9 = arith.constant 0 : index
      %c0_10 = arith.constant 0 : index
      %c0_11 = arith.constant 0 : index
      %18 = vector.load %arg8[%c0_9, %c0_10, %c0_11] : memref<1x8x288xf32, #tpu.memory_space<vmem>>, vector<1x8x288xf32>
      %19 = vector.shape_cast %18 : vector<1x8x288xf32> to vector<8x288xf32>
      %20 = vector.shape_cast %17 : vector<8x288xf32> to vector<1x8x288xf32>
      tpu.vector_store %arg8[%c0_9, %c0_10, %c0_11], %20 {strides = array<i32>} : memref<1x8x288xf32, #tpu.memory_space<vmem>>, vector<1x8x288xf32>,
    } else {
    }
    return
  }
  func.func @transform_0(%arg0: i32, %arg1: i32) -> (i32, i32, i32) {
    %c1_i32 = arith.constant 1 : i32
    %0 = arith.subi %c1_i32, %arg0 : i32
    %1 = arith.muli %0, %arg1 : i32
    %c0_i32 = arith.constant 0 : i32
    %c0_i32_0 = arith.constant 0 : i32
    %c0_i32_1 = arith.constant 0 : i32
    return %1, %c0_i32, %c0_i32_0 : i32, i32, i32
  }
  func.func @transform_1(%arg0: i32, %arg1: i32) -> (i32, i32, i32) {
    %c0_i32 = arith.constant 0 : i32
    %c0_i32_0 = arith.constant 0 : i32
    %c0_i32_1 = arith.constant 0 : i32
    %c0_i32_2 = arith.constant 0 : i32
    return %c0_i32, %c0_i32_0, %c0_i32_1 : i32, i32, i32
  }
  func.func @transform_2(%arg0: i32, %arg1: i32) -> (i32, i32) {
    %c0_i32 = arith.constant 0 : i32
    %c0_i32_0 = arith.constant 0 : i32
    %c0_i32_1 = arith.constant 0 : i32
    return %c0_i32, %c0_i32_0 : i32, i32
  }
  func.func @transform_3(%arg0: i32, %arg1: i32) -> (i32, i32) {
    %c0_i32 = arith.constant 0 : i32
    %c0_i32_0 = arith.constant 0 : i32
    %c0_i32_1 = arith.constant 0 : i32
    return %c0_i32, %c0_i32_0 : i32, i32
  }
  func.func @transform_4(%arg0: i32, %arg1: i32) -> (i32, i32) {
    %c0_i32 = arith.constant 0 : i32
    %c0_i32_0 = arith.constant 0 : i32
    %c0_i32_1 = arith.constant 0 : i32
    return %c0_i32, %c0_i32_0 : i32, i32
  }
  func.func @transform_5(%arg0: i32, %arg1: i32) -> (i32, i32) {
    %c0_i32 = arith.constant 0 : i32
    %c0_i32_0 = arith.constant 0 : i32
    %c0_i32_1 = arith.constant 0 : i32
    return %c0_i32, %c0_i32_0 : i32, i32
  }
  func.func @transform_6(%arg0: i32, %arg1: i32) -> (i32, i32, i32) {
    %0 = arith.muli %arg0, %arg1 : i32
    %c0_i32 = arith.constant 0 : i32
    %c0_i32_0 = arith.constant 0 : i32
    %c0_i32_1 = arith.constant 0 : i32
    return %0, %c0_i32, %c0_i32_0 : i32, i32, i32
  }
}

</mosaic_0001>

<bundles_post_ra>
// kernel: conv_bn.1
= control target key start
LH: loop header
LB: loop body
LE: loop exit
PB: predicated region body
PF: predicated region fallthrough
CT: control target
= control target key end

     0   :  { %s1718_s21 = smov 0   ;;  %s1720_s22 = smov 0   ;;  %s1920_s0 = inlined_call_operand.vmem [shape: bf16[2,4,326], index: 0, kind: input, shape index: {}]   ;;  %s1921_s1 = inlined_call_operand.vmem [shape: bf16[9,8,4], index: 1, kind: input, shape index: {}]   ;;  %s1922_s2 = inlined_call_operand.vmem [shape: f32[8,1], index: 2, kind: input, shape index: {}]   ;;  %s1923_s3 = inlined_call_operand.vmem [shape: f32[8,1], index: 3, kind: input, shape index: {}]   ;;  %s1924_s4 = inlined_call_operand.vmem [shape: f32[8,1], index: 4, kind: input, shape index: {}]   ;;  %s1925_s5 = inlined_call_operand.vmem [shape: f32[1,288], index: 5, kind: input, shape index: {}]   ;;  %s1926_s6 = inlined_call_operand.vmem [shape: f32[2,8,288], index: 6, kind: output, shape index: {}]  }
   0x1   :  { %s1722_s23 = smov 0   ;;  %s1724_s24 = smov 0  }
   0x2   :  { %s1726_s25 = smov 0  }
   0x3 LB: > { %s25_s26 = sadd.s32 1, %s1659_s23  ;;  %s28_s27 = sadd.s32 1, %s1663_s24  ;;  %s1667_s25 = sphi %s1726_s25, %s16_s25   ;;  %s1663_s24 = sphi %s1724_s24, %s1930_s24   ;;  %s1659_s23 = sphi %s1722_s23, %s1929_s23   ;;  %s1655_s22 = sphi %s1720_s22, %s1928_s22   ;;  %s1651_s21 = sphi %s1718_s21, %s1927_s21  }
   0x4   : > { %p26_p0 = scmp.ge.s32.totalorder %s25_s26, 2  ;;  %p1448_p1 = scmp.ge.s32.totalorder %s1667_s25, 1 }
   0x5   : > { %p234_p2 = scmp.lt.s32.totalorder %s1667_s25, 5 }
   0x6   : > { %s1932_s26 = smov (%p26_p0, %s25_s26), 0  ;;  %s1934_s27 = smov (!%p26_p0, %s28_s27), %s1663_s24 }
   0x7   : > { %p235_p3 = pnand %p1448_p1, %p234_p2  ;;  %p30_p4 = scmp.ge.s32.totalorder %s1934_s27, 2 }
   0x8   : > { %s267_s28 = ssub.s32 (!%p235_p3), 1, %s1655_s22  ;;  %s276_s29 = smul.u32 (!%p235_p3), %s1651_s21, %s1655_s22 }
   0x9   : > { %s1936_s27 = smov (%p30_p4, %s1934_s27), 0  ;;  %238 = sbr.rel (%p235_p3) target bundleno = 751 (0x2ef), region = 44 }
   0xa   : > { %s268_s30 = smul.u32 (!%p235_p3), %s1651_s21, %s267_s28  ;;  %p277_p5 = scmp.lt.s32.totalorder (!%p235_p3), %s276_s29, 1 }
   0xb   : > { %p1451_p7 = scmp.ne.s32.totalorder (!%p235_p3), %s1655_s22, 0 }
   0xc   : > { %p269_p6 = scmp.lt.s32.totalorder (!%p235_p3), %s268_s30, 1 }
   0xe   : > { %s1938_s29 = smov (!%p277_p5, %s276_s29), 1  ;;  %s1940_s30 = smov (!%p269_p6, %s268_s30), 1 }
   0xf   : > { %s1569_s7 = smul.u32 24, %s1938_s29  ;;  %p1452_p8 = scmp.ne.s32.totalorder (!%p1451_p7), %s1651_s21, 0 }
  0x10   : > { %s1568_s8 = smul.u32 6, %s1940_s30 }
  0x11   : > { %s1759_s11 = scalar_lea.vmem %s1926_s6, %s1569_s7  ;;  %287 = sbr.rel (%p1451_p7) target bundleno = 574 (0x23e), region = 48 }
  0x12   : > { %s273_s14 = scalar_lea.vmem %s1920_s0, %s1568_s8 }
  0x16   : > { %291 = sbr.rel (%p1452_p8) target bundleno = 29 (0x1d), region = 52 }
  0x1b   : > { %vm292_vm0 = vcmask 7168   ;;  %v1669_v0 = vmov 0.0  }
  0x1c   : > { %293 = vst.msk [vmem:[#allocation3] sm:$0xff] %vm292_vm0, %v1669_v0  ;;  %294 = vst.msk [vmem:[#allocation4] sm:$0xff] %vm292_vm0, %v1669_v0 }
  0x1d PF: > { %v295_v1 = vld [vmem:[%s273_s14] sm:$0x3f]  ;;  %v304_v2 = vlaneseq  ;;  %v1670_v3 = vmov 1983009808   ;;  %v1671_v6 = vmov 0.0   ;;  %vm1672_vm1 = vmmov 0  }
  0x1e   : > { %v302_v4 = vunpack.c.l.s4 %v1670_v3  ;;  %1514 = vmatprep.subr.bf16.mxu1 %v1671_v6  ;;  %v300_v8 = vcombine.high %v295_v1, %v295_v1  ;;  %1516 = vmatprep.mubr.msk.bf16.mxu1 %vm1672_vm1, %v1671_v6  ;;  %v1673_v9 = vmov 0   ;;  %s1674_s15 = smov 127   ;;  %s1675_s16 = smov 126   ;;  %v1262_v14 = vld [vmem:[%s1922_s2] sm:$0xff]  ;;  %vm329_vm2 = vcmask 1041408  }
  0x1f   : > { %v1766_v5 = vshrl.u32 %v304_v2, 7  ;;  %371 = vmatprep.mubr.bf16.mxu0 %v1673_v9  ;;  %1624 = vset.pattern.permute.xlu0 %v1673_v9  ;;  %s1676_s17 = smov 110   ;;  %s1677_s18 = smov 109   ;;  %v1453_v18 = vld [vmem:[%s1921_s1 + $0x4] sm:$0xf]  ;;  %vm325_vm3 = vcmask 31744  }
  0x20   : > { %v303_v7 = vunpack.c.0.s8 %v302_v4  ;;  %s1678_s19 = smov 108   ;;  %s1679_s20 = smov 92   ;;  %vm322_vm4 = vcmask 1039360   ;;  %vm521_vm5 = vcmask 1031168   ;;  %v296_v29 = vld [vmem:[%s1921_s1] sm:$0xf] }
  0x21   : > { %s1680_s28 = smov 91   ;;  %s1681_s29 = smov 90   ;;  %vm628_vm6 = vcmask 900096   ;;  %v1460_v38 = vld [vmem:[%s1921_s1 + $0x8] sm:$0xf]  ;;  %vm735_vm7 = vcmask 891904  }
  0x22   : > { %v306_v10 = vsub.s32 %v303_v7, %v1766_v5  ;;  %v1464_v46 = vld [vmem:[%s1921_s1 + $0xc] sm:$0xf]  ;;  %vm842_vm8 = vcmask 883712   ;;  %v1468_v54 = vld [vmem:[%s1921_s1 + $0x10] sm:$0xf]  ;;  %vm949_vm9 = vcmask 752640  }
  0x23   : > { %v1472_v62 = vld [vmem:[%s1921_s1 + $0x14] sm:$0xf]  ;;  %vm1056_vm10 = vcmask 744448   ;;  %vm1163_vm11 = vcmask 736256   ;;  %s1494_s10 = smul.u32 24, %s1651_s21  ;;  %vm1276_vm12 = vcmask 261120  }
  0x24   : > { %v307_v11 = vrot.slane %v295_v1, %v306_v10  ;;  %v314_v12 = vrot.slane %v300_v8, %v306_v10  ;;  %v1476_v8 = vld [vmem:[%s1921_s1 + $0x18] sm:$0xf]  ;;  %vm1305_vm13 = vcmask 7168  }
  0x25   : > { %s1273_s14 = scalar_lea.vmem [#allocation2], %s1494_s10 }
  0x26   : > { %316 = vrot.lane.b32.xlu0 %v307_v11, %s1674_s15  ;;  %320 = vrot.lane.b32.xlu1 %v314_v12, %s1674_s15  ;;  %v315_v13 = vcombine.high %v307_v11, %v307_v11  ;;  %v430_v19 = vsel %vm329_vm2, %v314_v12, 0  ;;  %v424_v25 = vsel %vm329_vm2, %v307_v11, 0 }
  0x2a   : > { %318 = vrot.lane.b32.xlu0 %v315_v13, %s1674_s15  ;;  %515 = vrot.lane.b32.xlu1 %v307_v11, %s1675_s16 }
  0x2e   : > { %517 = vrot.lane.b32.xlu0 %v315_v13, %s1675_s16  ;;  %519 = vrot.lane.b32.xlu1 %v314_v12, %s1675_s16 }
  0x32   : > { %622 = vrot.lane.b32.xlu0 %v307_v11, %s1676_s17  ;;  %624 = vrot.lane.b32.xlu1 %v315_v13, %s1676_s17 }
  0x36   : > { %626 = vrot.lane.b32.xlu0 %v314_v12, %s1676_s17  ;;  %729 = vrot.lane.b32.xlu1 %v307_v11, %s1677_s18 }
  0x3a   : > { %731 = vrot.lane.b32.xlu0 %v315_v13, %s1677_s18  ;;  %733 = vrot.lane.b32.xlu1 %v314_v12, %s1677_s18 }
  0x3e   : > { %836 = vrot.lane.b32.xlu0 %v307_v11, %s1678_s19  ;;  %838 = vrot.lane.b32.xlu1 %v315_v13, %s1678_s19 }
  0x42   : > { %840 = vrot.lane.b32.xlu0 %v314_v12, %s1678_s19  ;;  %943 = vrot.lane.b32.xlu1 %v307_v11, %s1679_s20 }
  0x46   : > { %945 = vrot.lane.b32.xlu0 %v315_v13, %s1679_s20  ;;  %947 = vrot.lane.b32.xlu1 %v314_v12, %s1679_s20 }
  0x4a   : > { %1050 = vrot.lane.b32.xlu0 %v307_v11, %s1680_s28  ;;  %1052 = vrot.lane.b32.xlu1 %v315_v13, %s1680_s28 }
  0x4e   : > { %1054 = vrot.lane.b32.xlu0 %v314_v12, %s1680_s28  ;;  %1157 = vrot.lane.b32.xlu1 %v307_v11, %s1681_s29 }
  0x52   : > { %1159 = vrot.lane.b32.xlu0 %v315_v13, %s1681_s29  ;;  %1161 = vrot.lane.b32.xlu1 %v314_v12, %s1681_s29 }
  0x56   : > { %1265 = vperm.xlu0 %1624, %v1262_v14  }
  0x98   : > { %v317_v15 = vpop.permute.xlu0 %316  ;;  %v321_v16 = vpop.permute.xlu1 %320 }
  0x99   : > { %v337_v17 = vsel %vm329_vm2, %v321_v16, 0 }
  0x9a   : > { %1515 = vmatpush3.bf16.msra.mxu1 %v337_v17 }
  0x9b   : > { %1520 = vmatprep.subr.bf16.mxu1 %v1671_v6 }
  0x9c   : > { %v319_v20 = vpop.permute.xlu0 %318  ;;  %v516_v21 = vpop.permute.xlu1 %515 }
  0x9d   : > { %1517 = vmatmul.mubr.msk.bf16.vlgmr.msra.gmra.mxu1 %vm325_vm3, %v1453_v18  ;;  %v324_v22 = vsel %vm322_vm4, %v319_v20, %v321_v16  ;;  %v323_v23 = vsel %vm322_vm4, %v317_v15, %v319_v20  ;;  %v1480_v16 = vld [vmem:[%s1921_s1 + $0x1c] sm:$0xf]  ;;  %v1484_v20 = vld [vmem:[%s1921_s1 + $0x20] sm:$0xf] }
  0x9e   : > { %1454 = vmatprep.subr.msk.bf16.mxu0 %vm329_vm2, %v324_v22  ;;  %v331_v24 = vsel %vm329_vm2, %v323_v23, 0  ;;  %1521 = vmatpush3.bf16.msra.mxu1 %v430_v19 }
  0x9f   : > { %354 = vmatpush1.bf16.msra.mxu0 %v331_v24  ;;  %1522 = vmatprep.mubr.msk.bf16.mxu1 %vm1672_vm1, %v1671_v6 }
  0xa0   : > { %1457 = vmatprep.subr.msk.bf16.mxu0 %vm329_vm2, %v315_v13  ;;  %v518_v26 = vpop.permute.xlu0 %517  ;;  %v520_v27 = vpop.permute.xlu1 %519  ;;  %1526 = vmatprep.subr.bf16.mxu1 %v1671_v6 }
  0xa1   : > { %v523_v28 = vsel %vm521_vm5, %v518_v26, %v520_v27  ;;  %v534_v30 = vsel %vm329_vm2, %v520_v27, 0  ;;  %v522_v33 = vsel %vm521_vm5, %v516_v21, %v518_v26 }
  0xa2   : > { %1455 = vmatmul.mubr.msk.bf16.vlgmr.msra.gmra.mxu0 %vm325_vm3, %v1453_v18  ;;  %v528_v34 = vsel %vm329_vm2, %v522_v33, 0 }
  0xa3   : > { %447 = vmatpush1.bf16.msra.mxu0 %v424_v25  ;;  %464 = vmatprep.mubr.bf16.mxu0 %v1673_v9 }
  0xa4   : > { %1461 = vmatprep.subr.msk.bf16.mxu0 %vm329_vm2, %v523_v28  ;;  %v623_v31 = vpop.permute.xlu0 %622  ;;  %v625_v32 = vpop.permute.xlu1 %624 }
  0xa5   : > { %1523 = vmatmul.mubr.msk.bf16.vlgmr.msra.gmra.mxu1 %vm325_vm3, %v296_v29  ;;  %v629_v41 = vsel %vm628_vm6, %v623_v31, %v625_v32 }
  0xa6   : > { %1527 = vmatpush3.bf16.msra.mxu1 %v534_v30  ;;  %1528 = vmatprep.mubr.msk.bf16.mxu1 %vm1672_vm1, %v1671_v6  ;;  %v635_v43 = vsel %vm329_vm2, %v629_v41, 0 }
  0xa7   : > { %1532 = vmatprep.subr.bf16.mxu1 %v1671_v6 }
  0xa8   : > { %v627_v35 = vpop.permute.xlu0 %626  ;;  %v730_v36 = vpop.permute.xlu1 %729 }
  0xa9   : > { %v630_v37 = vsel %vm628_vm6, %v625_v32, %v627_v35  ;;  %v641_v39 = vsel %vm329_vm2, %v627_v35, 0 }
  0xaa   : > { %1458 = vmatmul.mubr.msk.bf16.vlgmr.msra.gmra.mxu0 %vm325_vm3, %v296_v29 }
  0xab   : > { %551 = vmatpush1.bf16.msra.mxu0 %v528_v34  ;;  %568 = vmatprep.mubr.bf16.mxu0 %v1673_v9 }
  0xac   : > { %1465 = vmatprep.subr.msk.bf16.mxu0 %vm329_vm2, %v630_v37  ;;  %v732_v40 = vpop.permute.xlu0 %731  ;;  %v734_v42 = vpop.permute.xlu1 %733 }
  0xad   : > { %1529 = vmatmul.mubr.msk.bf16.vlgmr.msra.gmra.mxu1 %vm325_vm3, %v1460_v38  ;;  %v737_v45 = vsel %vm735_vm7, %v732_v40, %v734_v42  ;;  %v748_v48 = vsel %vm329_vm2, %v734_v42, 0  ;;  %v736_v49 = vsel %vm735_vm7, %v730_v36, %v732_v40 }
  0xae   : > { %1533 = vmatpush3.bf16.msra.mxu1 %v641_v39  ;;  %1534 = vmatprep.mubr.msk.bf16.mxu1 %vm1672_vm1, %v1671_v6  ;;  %v742_v51 = vsel %vm329_vm2, %v736_v49, 0 }
  0xaf   : > { %1538 = vmatprep.subr.bf16.mxu1 %v1671_v6 }
  0xb0   : > { %v837_v44 = vpop.permute.xlu0 %836  ;;  %v839_v47 = vpop.permute.xlu1 %838 }
  0xb1   : > { %v843_v57 = vsel %vm842_vm8, %v837_v44, %v839_v47 }
  0xb2   : > { %1462 = vmatmul.mubr.msk.bf16.vlgmr.msra.gmra.mxu0 %vm325_vm3, %v1460_v38  ;;  %v849_v59 = vsel %vm329_vm2, %v843_v57, 0 }
  0xb3   : > { %658 = vmatpush1.bf16.msra.mxu0 %v635_v43  ;;  %675 = vmatprep.mubr.bf16.mxu0 %v1673_v9 }
  0xb4   : > { %1469 = vmatprep.subr.msk.bf16.mxu0 %vm329_vm2, %v737_v45  ;;  %v841_v50 = vpop.permute.xlu0 %840  ;;  %v944_v52 = vpop.permute.xlu1 %943 }
  0xb5   : > { %1535 = vmatmul.mubr.msk.bf16.vlgmr.msra.gmra.mxu1 %vm325_vm3, %v1464_v46  ;;  %v844_v53 = vsel %vm842_vm8, %v839_v47, %v841_v50  ;;  %v855_v56 = vsel %vm329_vm2, %v841_v50, 0 }
  0xb6   : > { %1539 = vmatpush3.bf16.msra.mxu1 %v748_v48  ;;  %1540 = vmatprep.mubr.msk.bf16.mxu1 %vm1672_vm1, %v1671_v6 }
  0xb7   : > { %1544 = vmatprep.subr.bf16.mxu1 %v1671_v6 }
  0xb8   : > { %v946_v55 = vpop.permute.xlu0 %945  ;;  %v948_v58 = vpop.permute.xlu1 %947 }
  0xb9   : > { %v951_v61 = vsel %vm949_vm9, %v946_v55, %v948_v58  ;;  %v962_v0 = vsel %vm329_vm2, %v948_v58, 0  ;;  %v950_v1 = vsel %vm949_vm9, %v944_v52, %v946_v55 }
  0xba   : > { %1466 = vmatmul.mubr.msk.bf16.vlgmr.msra.gmra.mxu0 %vm325_vm3, %v1464_v46  ;;  %v956_v3 = vsel %vm329_vm2, %v950_v1, 0 }
  0xbb   : > { %765 = vmatpush1.bf16.msra.mxu0 %v742_v51  ;;  %782 = vmatprep.mubr.bf16.mxu0 %v1673_v9 }
  0xbc   : > { %1473 = vmatprep.subr.msk.bf16.mxu0 %vm329_vm2, %v844_v53  ;;  %v1051_v60 = vpop.permute.xlu0 %1050  ;;  %v1053_v63 = vpop.permute.xlu1 %1052 }
  0xbd   : > { %1541 = vmatmul.mubr.msk.bf16.vlgmr.msra.gmra.mxu1 %vm325_vm3, %v1468_v54  ;;  %v1057_v11 = vsel %vm1056_vm10, %v1051_v60, %v1053_v63 }
  0xbe   : > { %1545 = vmatpush3.bf16.msra.mxu1 %v855_v56  ;;  %1546 = vmatprep.mubr.msk.bf16.mxu1 %vm1672_vm1, %v1671_v6  ;;  %v1063_v14 = vsel %vm329_vm2, %v1057_v11, 0 }
  0xbf   : > { %1550 = vmatprep.subr.bf16.mxu1 %v1671_v6 }
  0xc0   : > { %v1055_v2 = vpop.permute.xlu0 %1054  ;;  %v1158_v4 = vpop.permute.xlu1 %1157 }
  0xc1   : > { %v1058_v7 = vsel %vm1056_vm10, %v1053_v63, %v1055_v2  ;;  %v1069_v10 = vsel %vm329_vm2, %v1055_v2, 0 }
  0xc2   : > { %1470 = vmatmul.mubr.msk.bf16.vlgmr.msra.gmra.mxu0 %vm325_vm3, %v1468_v54 }
  0xc3   : > { %872 = vmatpush1.bf16.msra.mxu0 %v849_v59  ;;  %889 = vmatprep.mubr.bf16.mxu0 %v1673_v9 }
  0xc4   : > { %1477 = vmatprep.subr.msk.bf16.mxu0 %vm329_vm2, %v951_v61  ;;  %v1160_v12 = vpop.permute.xlu0 %1159  ;;  %v1162_v13 = vpop.permute.xlu1 %1161 }
  0xc5   : > { %1547 = vmatmul.mubr.msk.bf16.vlgmr.msra.gmra.mxu1 %vm325_vm3, %v1472_v62  ;;  %v1165_v15 = vsel %vm1163_vm11, %v1160_v12, %v1162_v13  ;;  %v1176_v17 = vsel %vm329_vm2, %v1162_v13, 0  ;;  %v1164_v18 = vsel %vm1163_vm11, %v1158_v4, %v1160_v12 }
  0xc6   : > { %1551 = vmatpush3.bf16.msra.mxu1 %v962_v0  ;;  %1552 = vmatprep.mubr.msk.bf16.mxu1 %vm1672_vm1, %v1671_v6  ;;  %v1170_v19 = vsel %vm329_vm2, %v1164_v18, 0 }
  0xc7   : > { %1556 = vmatprep.subr.bf16.mxu1 %v1671_v6 }
  0xca   : > { %1474 = vmatmul.mubr.msk.bf16.vlgmr.msra.gmra.mxu0 %vm325_vm3, %v1472_v62 }
  0xcb   : > { %979 = vmatpush1.bf16.msra.mxu0 %v956_v3  ;;  %996 = vmatprep.mubr.bf16.mxu0 %v1673_v9 }
  0xcc   : > { %1481 = vmatprep.subr.msk.bf16.mxu0 %vm329_vm2, %v1058_v7 }
  0xcd   : > { %1553 = vmatmul.mubr.msk.bf16.vlgmr.msra.gmra.mxu1 %vm325_vm3, %v1476_v8 }
  0xce   : > { %1557 = vmatpush3.bf16.msra.mxu1 %v1069_v10  ;;  %1558 = vmatprep.mubr.msk.bf16.mxu1 %vm1672_vm1, %v1671_v6 }
  0xcf   : > { %1562 = vmatprep.subr.bf16.mxu1 %v1671_v6 }
  0xd2   : > { %1478 = vmatmul.mubr.msk.bf16.vlgmr.msra.gmra.mxu0 %vm325_vm3, %v1476_v8 }
  0xd3   : > { %1086 = vmatpush1.bf16.msra.mxu0 %v1063_v14  ;;  %1103 = vmatprep.mubr.bf16.mxu0 %v1673_v9 }
  0xd4   : > { %1485 = vmatprep.subr.msk.bf16.mxu0 %vm329_vm2, %v1165_v15 }
  0xd5   : > { %1559 = vmatmul.mubr.msk.bf16.vlgmr.msra.gmra.mxu1 %vm325_vm3, %v1480_v16 }
  0xd6   : > { %1563 = vmatpush3.bf16.msra.mxu1 %v1176_v17  ;;  %1564 = vmatprep.mubr.msk.bf16.mxu1 %vm1672_vm1, %v1671_v6 }
  0xda   : > { %1482 = vmatmul.mubr.msk.bf16.vlgmr.msra.gmra.mxu0 %vm325_vm3, %v1480_v16 }
  0xdb   : > { %1193 = vmatpush1.bf16.msra.mxu0 %v1170_v19  ;;  %1210 = vmatprep.mubr.bf16.mxu0 %v1673_v9 }
  0xdd   : > { %1565 = vmatmul.mubr.msk.bf16.vlgmr.msra.gmra.mxu1 %vm325_vm3, %v1484_v20 }
  0xe2   : > { %1486 = vmatmul.mubr.msk.bf16.vlgmr.msra.gmra.mxu0 %vm325_vm3, %v1484_v20 }
 0x15d   : > { %v414_v21 = vpop.f32.mrf.mxu1 }
 0x15f   : > { %v1518_v22 = vpop.f32.mrf.mxu1 }
 0x161   : > { %v417_v23 = vpop.f32.mrf.mxu1 }
 0x162   : > { %v373_v24 = vpop.f32.mrf.mxu0 }
 0x163   : > { %v1519_v6 = vpop.f32.mrf.mxu1 }
 0x164   : > { %v375_v25 = vpop.f32.mrf.mxu0 }
 0x165   : > { %v507_v26 = vpop.f32.mrf.mxu1 }
 0x166   : > { %v377_v27 = vpop.f32.mrf.mxu0  ;;  %v508_v4 = vadd.f32 %v507_v26, %v414_v21 }
 0x167   : > { %v1524_v28 = vpop.f32.mrf.mxu1 }
 0x168   : > { %v378_v29 = vpop.f32.mrf.mxu0 }
 0x169   : > { %v510_v30 = vpop.f32.mrf.mxu1 }
 0x16a   : > { %v466_v31 = vpop.f32.mrf.mxu0 }
 0x16b   : > { %v1525_v32 = vpop.f32.mrf.mxu1  ;;  %v467_v15 = vadd.f32 %v466_v31, %v373_v24 }
 0x16c   : > { %v468_v33 = vpop.f32.mrf.mxu0 }
 0x16d   : > { %v611_v34 = vpop.f32.mrf.mxu1  ;;  %v469_v19 = vadd.f32 %v468_v33, %v375_v25 }
 0x16e   : > { %v470_v9 = vpop.f32.mrf.mxu0  ;;  %v619_v10 = vadd.f32 %v611_v34, %v508_v4 }
 0x16f   : > { %v1530_v35 = vpop.f32.mrf.mxu1 }
 0x170   : > { %v471_v36 = vpop.f32.mrf.mxu0 }
 0x171   : > { %v614_v37 = vpop.f32.mrf.mxu1 }
 0x172   : > { %v570_v38 = vpop.f32.mrf.mxu0  ;;  %v1266_v37 = vpop.permute.xlu0 %1265 }
 0x173   : > { %v1531_v39 = vpop.f32.mrf.mxu1  ;;  %v617_v20 = vadd.f32 %v570_v38, %v467_v15  ;;  %v1290_v38 = vsub.s32 2, %v1766_v5  ;;  %v1307_v15 = vld [vmem:[#allocation4] sm:$0xff] }
 0x174   : > { %v572_v40 = vpop.f32.mrf.mxu0 }
 0x175   : > { %v718_v41 = vpop.f32.mrf.mxu1  ;;  %v618_v27 = vadd.f32 %v572_v40, %v469_v19 }
 0x176   : > { %v574_v42 = vpop.f32.mrf.mxu0  ;;  %v726_v13 = vadd.f32 %v718_v41, %v619_v10  ;;  %v1278_v41 = vld [vmem:[%s1925_s5] sm:$0x7] }
 0x177   : > { %v1536_v43 = vpop.f32.mrf.mxu1  ;;  %v1282_v42 = vsub.s32 0, %v1766_v5 }
 0x178   : > { %v575_v44 = vpop.f32.mrf.mxu0 }
 0x179   : > { %v721_v45 = vpop.f32.mrf.mxu1 }
 0x17a   : > { %v677_v46 = vpop.f32.mrf.mxu0 }
 0x17b   : > { %v1537_v47 = vpop.f32.mrf.mxu1  ;;  %v724_v28 = vadd.f32 %v677_v46, %v617_v20 }
 0x17c   : > { %v679_v48 = vpop.f32.mrf.mxu0 }
 0x17d   : > { %v825_v49 = vpop.f32.mrf.mxu1  ;;  %v725_v30 = vadd.f32 %v679_v48, %v618_v27  ;;  %v1286_v48 = vsub.s32 1, %v1766_v5 }
 0x17e   : > { %v681_v50 = vpop.f32.mrf.mxu0  ;;  %v833_v17 = vadd.f32 %v825_v49, %v726_v13  ;;  %v1298_v13 = vld [vmem:[#allocation3] sm:$0xff] }
 0x17f   : > { %v1542_v51 = vpop.f32.mrf.mxu1 }
 0x180   : > { %v682_v52 = vpop.f32.mrf.mxu0  ;;  %v1291_v51 = vrot.slane %v1278_v41, %v1290_v38 }
 0x181   : > { %v828_v53 = vpop.f32.mrf.mxu1 }
 0x182   : > { %v784_v54 = vpop.f32.mrf.mxu0 }
 0x183   : > { %v1543_v55 = vpop.f32.mrf.mxu1  ;;  %v831_v32 = vadd.f32 %v784_v54, %v724_v28  ;;  %v1283_v54 = vrot.slane %v1278_v41, %v1282_v42 }
 0x184   : > { %v786_v56 = vpop.f32.mrf.mxu0 }
 0x185   : > { %v932_v57 = vpop.f32.mrf.mxu1  ;;  %v832_v31 = vadd.f32 %v786_v56, %v725_v30 }
 0x186   : > { %v788_v58 = vpop.f32.mrf.mxu0  ;;  %v940_v23 = vadd.f32 %v932_v57, %v833_v17 }
 0x187   : > { %v1548_v59 = vpop.f32.mrf.mxu1 }
 0x188   : > { %v789_v60 = vpop.f32.mrf.mxu0  ;;  %v1287_v59 = vrot.slane %v1278_v41, %v1286_v48 }
 0x189   : > { %v935_v61 = vpop.f32.mrf.mxu1 }
 0x18a   : > { %v891_v62 = vpop.f32.mrf.mxu0 }
 0x18b   : > { %v1549_v63 = vpop.f32.mrf.mxu1  ;;  %v938_v35 = vadd.f32 %v891_v62, %v831_v32 }
 0x18c   : > { %v893_v0 = vpop.f32.mrf.mxu0 }
 0x18d   : > { %v1039_v1 = vpop.f32.mrf.mxu1  ;;  %v939_v39 = vadd.f32 %v893_v0, %v832_v31 }
 0x18e   : > { %v895_v2 = vpop.f32.mrf.mxu0  ;;  %v1047_v26 = vadd.f32 %v1039_v1, %v940_v23 }
 0x18f   : > { %v1554_v3 = vpop.f32.mrf.mxu1 }
 0x190   : > { %v896_v7 = vpop.f32.mrf.mxu0 }
 0x191   : > { %v1042_v8 = vpop.f32.mrf.mxu1 }
 0x192   : > { %v998_v11 = vpop.f32.mrf.mxu0 }
 0x193   : > { %v1555_v12 = vpop.f32.mrf.mxu1  ;;  %v1045_v40 = vadd.f32 %v998_v11, %v938_v35 }
 0x194   : > { %v1000_v14 = vpop.f32.mrf.mxu0 }
 0x195   : > { %v1146_v16 = vpop.f32.mrf.mxu1  ;;  %v1046_v46 = vadd.f32 %v1000_v14, %v939_v39 }
 0x196   : > { %v1002_v18 = vpop.f32.mrf.mxu0  ;;  %v1154_v9 = vadd.f32 %v1146_v16, %v1047_v26 }
 0x197   : > { %v1560_v22 = vpop.f32.mrf.mxu1 }
 0x198   : > { %v1003_v6 = vpop.f32.mrf.mxu0 }
 0x199   : > { %v1149_v21 = vpop.f32.mrf.mxu1 }
 0x19a   : > { %v1105_v29 = vpop.f32.mrf.mxu0 }
 0x19b   : > { %v1561_v34 = vpop.f32.mrf.mxu1  ;;  %v1152_v47 = vadd.f32 %v1105_v29, %v1045_v40 }
 0x19c   : > { %v1107_v24 = vpop.f32.mrf.mxu0 }
 0x19d   : > { %v1253_v36 = vpop.f32.mrf.mxu1  ;;  %v1153_v52 = vadd.f32 %v1107_v24, %v1046_v46 }
 0x19e   : > { %v1261_v25 = vadd.f32 %v1253_v36, %v1154_v9  ;;  %v1109_v33 = vpop.f32.mrf.mxu0 }
 0x19f   : > { %v1566_v43 = vpop.f32.mrf.mxu1 }
 0x1a0   : > { %v1270_v44 = vadd.f32 %v1266_v37, %v1261_v25  ;;  %v1110_v45 = vpop.f32.mrf.mxu0 }
 0x1a1   : > { %v1256_v49 = vpop.f32.mrf.mxu1 }
 0x1a2   : > { %v1212_v50 = vpop.f32.mrf.mxu0  ;;  %1277 = vst.msk [vmem:[%s1273_s14 + $0x10] sm:$0xff] %vm1276_vm12, %v1270_v44  ;;  %v1297_v61 = vmul.f32 %v1291_v51, %v1270_v44 }
 0x1a3   : > { %v1259_v53 = vadd.f32 %v1212_v50, %v1152_v47  ;;  %v1567_v55 = vpop.f32.mrf.mxu1 }
 0x1a4   : > { %v1214_v56 = vpop.f32.mrf.mxu0  ;;  %v1310_v1 = vmul.f32 %v1297_v61, %v1297_v61  ;;  %v1300_v7 = vsel %vm1276_vm12, %v1297_v61, 0.0 }
 0x1a5   : > { %v1268_v57 = vadd.f32 %v1266_v37, %v1259_v53  ;;  %v1260_v58 = vadd.f32 %v1214_v56, %v1153_v52 }
 0x1a6   : > { %v1216_v60 = vpop.f32.mrf.mxu0  ;;  %v1312_v11 = vsel %vm1276_vm12, %v1310_v1, 0.0 }
 0x1a7   : > { %1274 = vst [vmem:[%s1273_s14] sm:$0xff] %v1268_v57  ;;  %v1295_v62 = vmul.f32 %v1283_v54, %v1268_v57  ;;  %v1269_v63 = vadd.f32 %v1266_v37, %v1260_v58 }
 0x1a8   : > { %v1217_v5 = vpop.f32.mrf.mxu0 }
 0x1a9   : > { %1275 = vst [vmem:[%s1273_s14 + $0x8] sm:$0xff] %v1269_v63  ;;  %v1296_v0 = vmul.f32 %v1287_v59, %v1269_v63  ;;  %v1308_v3 = vmul.f32 %v1295_v62, %v1295_v62 }
 0x1ab   : > { %v1299_v2 = vadd.f32 %v1296_v0, %v1295_v62  ;;  %v1309_v4 = vmul.f32 %v1296_v0, %v1296_v0 }
 0x1ad   : > { %v1301_v8 = vadd.f32 %v1300_v7, %v1299_v2  ;;  %v1311_v10 = vadd.f32 %v1309_v4, %v1308_v3 }
 0x1af   : > { %1302 = vadd.xlane.f32.xlu1 %v1301_v8  ;;  %v1313_v12 = vadd.f32 %v1312_v11, %v1311_v10 }
 0x1b1   : > { %1314 = vadd.xlane.f32.xlu0 %v1313_v12 }
 0x238   : > { %v1303_v14 = vpop.xlane.xlu1 %1302 }
 0x239   : > { %v1304_v16 = vadd.f32 %v1303_v14, %v1298_v13 }
 0x23a   : > { %v1315_v17 = vpop.xlane.xlu0 %1314 }
 0x23b   : > { %1306 = vst.msk [vmem:[#allocation3] sm:$0xff] %vm1305_vm13, %v1304_v16  ;;  %v1316_v18 = vadd.f32 %v1315_v17, %v1307_v15 }
 0x23d   : > { %1317 = vst.msk [vmem:[#allocation4] sm:$0xff] %vm1305_vm13, %v1316_v18 }
 0x23e PF: > { %p1489_p9 = scmp.ne.s32.totalorder %s1655_s22, 1 }
 0x23f   : > { %p1490_p10 = scmp.ne.s32.totalorder (!%p1489_p9), %s1651_s21, 0 }
 0x240   : > { %1321 = sbr.rel (%p1489_p9) target bundleno = 751 (0x2ef), region = 56 }
 0x245   : > { %1325 = sbr.rel (%p1490_p10) target bundleno = 616 (0x268), region = 60 }
 0x24a   : > { %v1326_v19 = vld [vmem:[#allocation3] sm:$0xff]  ;;  %v1328_v20 = vld [vmem:[#allocation4] sm:$0xff]  ;;  %v1334_v21 = vld [vmem:[%s1923_s3] sm:$0xff]  ;;  %vm1336_vm14 = vcmask 7168  }
 0x24b   : > { %v1327_v22 = vmul.f32 0.001953125, %v1326_v19  ;;  %v1329_v23 = vmul.f32 0.001953125, %v1328_v20  ;;  %v1338_v30 = vld [vmem:[%s1924_s4] sm:$0xff] }
 0x24d   : > { %v1330_v6 = vmul.f32 %v1327_v22, %v1327_v22 }
 0x24f   : > { %v1331_v27 = vsub.f32 %v1329_v23, %v1330_v6 }
 0x251   : > { %v1332_v28 = vadd.f32 1e-05, %v1331_v27 }
 0x253   : > { %1626 = vrsqrt.f32 %v1332_v28 }
 0x260   : > { %v1627_v26 = vpop.eup %1626 }
 0x261   : > { %v1335_v29 = vmul.f32 %v1627_v26, %v1334_v21 }
 0x263   : > { %1337 = vst.msk [vmem:[#allocation5] sm:$0xff] %vm1336_vm14, %v1335_v29  ;;  %v1339_v32 = vmul.f32 %v1335_v29, %v1327_v22 }
 0x265   : > { %v1340_v34 = vsub.f32 %v1338_v30, %v1339_v32 }
 0x267   : > { %1341 = vst.msk [vmem:[#allocation6] sm:$0xff] %vm1336_vm14, %v1340_v34 }
 0x268 PF: > { %v1682_v24 = vmov 0   ;;  %s1495_s18 = smul.u32 24, %s1651_s21  ;;  %vm1368_vm15 = vcmask 261120  }
 0x269   : > { %1628 = vset.pattern.permute.xlu0 %v1682_v24 }
 0x26a   : > { %v1348_v9 = vld [vmem:[#allocation5] sm:$0xff]  ;;  %s1344_s19 = scalar_lea.vmem [#allocation2], %s1495_s18 }
 0x26b   : > { %1351 = vperm.xlu0 %1628, %v1348_v9   ;;  %v1345_v36 = vld [vmem:[%s1344_s19] sm:$0xff]  ;;  %v1346_v37 = vld [vmem:[%s1344_s19 + $0x8] sm:$0xff]  ;;  %v1347_v25 = vld [vmem:[%s1344_s19 + $0x10] sm:$0xff] }
 0x26e   : > { %v1357_v31 = vld [vmem:[#allocation6] sm:$0xff] }
 0x26f   : > { %1360 = vperm.xlu0 %1628, %v1357_v31  }
 0x2e6   : > { %v1352_v35 = vpop.permute.xlu0 %1351 }
 0x2e7   : > { %v1354_v33 = vmul.f32 %v1352_v35, %v1345_v36  ;;  %v1355_v38 = vmul.f32 %v1352_v35, %v1346_v37  ;;  %v1356_v39 = vmul.f32 %v1352_v35, %v1347_v25 }
 0x2ea   : > { %v1361_v40 = vpop.permute.xlu0 %1360 }
 0x2eb   : > { %v1363_v41 = vadd.f32 %v1361_v40, %v1354_v33  ;;  %v1364_v42 = vadd.f32 %v1361_v40, %v1355_v38  ;;  %v1365_v43 = vadd.f32 %v1361_v40, %v1356_v39 }
 0x2ed   : > { %1366 = vst [vmem:[%s1759_s11] sm:$0xff] %v1363_v41  ;;  %1367 = vst [vmem:[%s1759_s11 + $0x8] sm:$0xff] %v1364_v42 }
 0x2ee   : > { %1369 = vst.msk [vmem:[%s1759_s11 + $0x10] sm:$0xff] %vm1368_vm15, %v1365_v43 }
 0x2ef PF: > { %s16_s25 = sadd.s32 1, %s1667_s25   ;;  %s1927_s21 = smov %s1659_s23 }
 0x2f0   : > { %p13_p11 = scmp.ge.s32.totalorder %s16_s25, 6   ;;  %s1928_s22 = smov %s1663_s24 }
 0x2f1   : > { %s1929_s23 = smov %s1932_s26  ;;  %s1930_s24 = smov %s1936_s27 }
 0x2f2   :  { %15 = sbr.rel (!%p13_p11) target bundleno = 3 (0x3), region = 100 }

</bundles_post_ra>
